<compile_context>
chip_gen: v5e
topology: v5e:2x2
jax: 0.10.0
libtpu: 0.0.40
codegen_flags: <defaults>
</compile_context>

<pallas_src>
import functools

import jax
import jax.numpy as jnp
import numpy as np
from jax.experimental import pallas as pl
from jax.experimental.pallas import tpu as pltpu


def _flow_filter_kernel(pos_ref, ix_ref, iy_ref, flow_ref, out_ref, mask_ref, *,
                        H, W, HW, HWp, mag_thr, area_count_thr, corner_thr):
    flow = flow_ref[...]                                   # (TB, 2*HWp) native dtype
    u = flow[:, :HWp].astype(jnp.float32)                  # lane-aligned split
    v = flow[:, HWp:].astype(jnp.float32)

    mag = jnp.sqrt(u * u + v * v)                          # (TB, HWp) f32 (EUP sqrt)
    over = (mag > mag_thr).astype(jnp.float32)             # (TB, HWp)

    # --- flow_area filter: count(|flow| > thr) > area_thr * HW (1/HW folded) ---
    f_area = jnp.sum(over, axis=-1, keepdims=True) > area_count_thr      # (TB, 1)

    # --- num_corners filter: four static single-lane probes of `over` ---
    tl = over[:, 0:1]
    tr = over[:, W - 1:W]
    bl = over[:, HW - W:HW - W + 1]
    br = over[:, HW - 1:HW]
    f_corners = (tl + tr + bl + br) >= corner_thr                        # (TB, 1)

    # --- patch_magnitude filter: bilinear (tent-weight) sample of mag at move_pos ---
    pos = pos_ref[...].astype(jnp.float32)                 # (TB, 2), x first, [-1,1]
    px = (pos[:, 0:1] + 1.0) * (0.5 * (W - 1))             # (TB, 1) pixel coords
    py = (pos[:, 1:2] + 1.0) * (0.5 * (H - 1))
    wx = jnp.maximum(1.0 - jnp.abs(ix_ref[...] - px), 0.0)  # (TB, HWp)
    wy = jnp.maximum(1.0 - jnp.abs(iy_ref[...] - py), 0.0)
    patch_mag = jnp.sum(mag * (wx * wy), axis=-1, keepdims=True)         # (TB, 1)
    f_patch = patch_mag < mag_thr

    filt = f_patch | f_area | f_corners                    # (TB, 1) bool

    # Exact parity with the reference masked assignment (0*NaN != 0, so no mul).
    zero = jnp.zeros((), dtype=out_ref.dtype)
    out_ref[...] = jnp.where(filt, zero, flow)
    mask_ref[...] = filt.astype(jnp.int32)                 # per-sample scalar mask


def _round_up(x, m):
    return ((x + m - 1) // m) * m


def flow_sample_filter(flow_samples, move_pos, *,
                       flow_magnitude_threshold=5.0,
                       flow_area_threshold=0.75,
                       num_corners_threshold=2):
    """flow_samples: [B, S, 2, H, W]; move_pos: [B, S, 2] in [-1, 1].

    Returns (filtered_flow [B, S, 2, H, W], filter_mask bool [B, S]).
    The dense [B,S,2,H,W] mask of the PyTorch module is just a broadcast of the
    returned compact mask; it is intentionally left to the consumer."""
    B, S, C, H, W = flow_samples.shape
    assert C == 2
    BS = B * S
    HW = H * W
    dtype = flow_samples.dtype
    itemsize = jnp.dtype(dtype).itemsize

    # Lane-pad each channel plane to a multiple of 128 so the u/v split inside
    # the kernel is a free, vreg-aligned slice (copy only in the misaligned case).
    HWp = _round_up(HW, 128)
    if HWp == HW:
        flow_flat = flow_samples.reshape(BS, 2 * HW)       # free under jit
    else:
        flow_flat = jnp.pad(flow_samples.reshape(BS, 2, HW),
                            ((0, 0), (0, 0), (0, HWp - HW))).reshape(BS, 2 * HWp)
    HW2p = 2 * HWp

    pos_flat = move_pos.reshape(BS, 2).astype(jnp.float32)

    # Grid-invariant pixel coordinate tables (hoisted out of the kernel body).
    lane = np.arange(HWp)
    ix_np = np.where(lane < HW, (lane % W).astype(np.float64), -1e6).astype(np.float32)
    iy_np = np.where(lane < HW, (lane // W).astype(np.float64), -1e6).astype(np.float32)
    ix = jnp.asarray(ix_np).reshape(1, HWp)
    iy = jnp.asarray(iy_np).reshape(1, HWp)

    # ---- block sizing (honest VMEM budget, dtype-aware sublane multiple) ----
    sub = max(8, 32 // itemsize)                 # 8 f32 / 16 bf16 / 32 int8-fp8
    # Per row of a block: 2 arrays (flow in + out) x 2 pipeline buffers in the
    # native dtype, plus ~10 live (tb, HWp) f32 temporaries inside the kernel.
    bytes_per_row = 4 * HW2p * itemsize + 10 * HWp * 4
    budget = 20 << 20                            # pipeline + temps target
    tb = max(sub, (budget // bytes_per_row) // sub * sub)
    tb = min(tb, 2048)
    # Keep >= ~4 grid steps when BS allows it, so ("parallel",) can actually
    # distribute blocks across both v7x TensorCores.
    min_blocks = min(4, max(1, BS // sub))
    tb = min(tb, max(sub, (BS // min_blocks) // sub * sub))
    tb = min(tb, _round_up(BS, sub))
    # Prefer a tb that divides BS exactly (no ragged final block, no pad/slice
    # copies) when a divisor exists within 2x of the VMEM-optimal size;
    # otherwise rely on Pallas partial-final-block masking (rows independent).
    if BS % sub == 0 and BS % tb != 0:
        d = tb
        while d > sub and BS % d != 0:
            d -= sub
        if BS % d == 0 and 2 * d >= tb:
            tb = d
    num_blocks = pl.cdiv(BS, tb)

    est_vmem = tb * bytes_per_row + 4 * HWp * 4 + tb * 64
    vmem_limit = int(min(56 << 20, max(32 << 20, (est_vmem * 3) // 2)))

    kernel = functools.partial(
        _flow_filter_kernel, H=H, W=W, HW=HW, HWp=HWp,
        mag_thr=float(flow_magnitude_threshold),
        area_count_thr=float(flow_area_threshold) * HW,
        corner_thr=float(num_corners_threshold))

    out_flow_flat, mask_i32 = pl.pallas_call(
        kernel,
        out_shape=(jax.ShapeDtypeStruct((BS, HW2p), dtype),
                   jax.ShapeDtypeStruct((BS, 1), jnp.int32)),
        grid=(num_blocks,),
        in_specs=[pl.BlockSpec((tb, 2), lambda i: (i, 0)),       # move_pos
                  pl.BlockSpec((1, HWp), lambda i: (0, 0)),      # ix (grid-invariant)
                  pl.BlockSpec((1, HWp), lambda i: (0, 0)),      # iy (grid-invariant)
                  pl.BlockSpec((tb, HW2p), lambda i: (i, 0))],   # flow (lane-dense)
        out_specs=(pl.BlockSpec((tb, HW2p), lambda i: (i, 0)),
                   pl.BlockSpec((tb, 1), lambda i: (i, 0))),
        input_output_aliases={3: 0},   # donate flow into the filtered output
        compiler_params=pltpu.CompilerParams(
            dimension_semantics=("parallel",),
            vmem_limit_bytes=vmem_limit),
    )(pos_flat, ix, iy, flow_flat)

    if HWp == HW:
        out_flow = out_flow_flat.reshape(B, S, 2, H, W)
    else:
        out_flow = out_flow_flat.reshape(B, S, 2, HWp)[..., :HW].reshape(B, S, 2, H, W)
    filter_mask = mask_i32[:, 0].reshape(B, S).astype(jnp.bool_)
    return out_flow, filter_mask


def _reference(flow_samples, move_pos, mag_thr=5.0, area_thr=0.75, corner_thr=2):
    """Pure-JAX reference with identical conventions (for correctness check)."""
    B, S, _, H, W = flow_samples.shape
    flow_f32 = flow_samples.astype(jnp.float32)
    mag = jnp.sqrt(jnp.sum(flow_f32 ** 2, axis=2))              # [B,S,H,W]
    over = (mag > mag_thr).astype(jnp.float32)

    f_area = (jnp.sum(over, axis=(-2, -1)) / (H * W)) > area_thr
    corners = over[..., 0, 0] + over[..., 0, -1] + over[..., -1, 0] + over[..., -1, -1]
    f_corners = corners >= corner_thr

    px = (move_pos[..., 0] + 1.0) * 0.5 * (W - 1)               # [B,S]
    py = (move_pos[..., 1] + 1.0) * 0.5 * (H - 1)
    iy = jnp.arange(H, dtype=jnp.float32)[None, None, :, None]
    ix = jnp.arange(W, dtype=jnp.float32)[None, None, None, :]
    wx = jnp.maximum(1.0 - jnp.abs(ix - px[..., None, None]), 0.0)
    wy = jnp.maximum(1.0 - jnp.abs(iy - py[..., None, None]), 0.0)
    patch_mag = jnp.sum(mag * wx * wy, axis=(-2, -1))
    f_patch = patch_mag < mag_thr

    filt = f_patch | f_area | f_corners                          # [B,S]
    out = jnp.where(filt[:, :, None, None, None], 0.0,
                    flow_samples).astype(flow_samples.dtype)
    return out, filt


if __name__ == "__main__":
    key = jax.random.PRNGKey(0)
    k1, k2, k3, k4 = jax.random.split(key, 4)

    # Main check: H*W % 128 == 0 -> zero-copy lane-aligned fast path, 2-step grid.
    B, S, H, W = 2, 8, 16, 16
    flow_samples = 8.0 * jax.random.normal(k1, (B, S, 2, H, W), dtype=jnp.float32)
    move_pos = jax.random.uniform(k2, (B, S, 2), dtype=jnp.float32,
                                  minval=-1.0, maxval=1.0)
    out_flow, filter_mask = flow_sample_filter(flow_samples, move_pos)
    out_flow = jax.block_until_ready(out_flow)
    filter_mask = jax.block_until_ready(filter_mask)
    ref_flow, ref_mask = _reference(flow_samples, move_pos)
    np.testing.assert_allclose(np.asarray(out_flow), np.asarray(ref_flow),
                               rtol=1e-5, atol=1e-5)
    np.testing.assert_array_equal(np.asarray(filter_mask), np.asarray(ref_mask))

    # Secondary check: lane-misaligned H*W (12*12=144) exercises the padded path.
    B2, S2, H2, W2 = 1, 8, 12, 12
    flow2 = 8.0 * jax.random.normal(k3, (B2, S2, 2, H2, W2), dtype=jnp.float32)
    pos2 = jax.random.uniform(k4, (B2, S2, 2), dtype=jnp.float32,
                              minval=-1.0, maxval=1.0)
    out2, mask2 = flow_sample_filter(flow2, pos2)
    out2 = jax.block_until_ready(out2)
    ref2, rmask2 = _reference(flow2, pos2)
    np.testing.assert_allclose(np.asarray(out2), np.asarray(ref2),
                               rtol=1e-5, atol=1e-5)
    np.testing.assert_array_equal(np.asarray(mask2), np.asarray(rmask2))

    print("KERNEL_OK")
</pallas_src>

<mosaic_0001>
module attributes {stable_mosaic.version = 11 : i64} {
  func.func @_flow_filter_kernel(%arg0: i32, %arg1: memref<8x2xf32, #tpu.memory_space<vmem>>, %arg2: memref<1x256xf32, #tpu.memory_space<vmem>>, %arg3: memref<1x256xf32, #tpu.memory_space<vmem>>, %arg4: memref<8x512xf32, #tpu.memory_space<vmem>>, %arg5: memref<8x512xf32, #tpu.memory_space<vmem>>, %arg6: memref<8x1xi32, #tpu.memory_space<vmem>>) attributes {dimension_semantics = [#tpu.dimension_semantics<parallel>], iteration_bounds = array<i64: 2>, scalar_prefetch = 0 : i64, scratch_operands = 0 : i64, tpu.core_type = #tpu.core_type<tc>, window_params = [{transform_indices = @transform_0, window_bounds = array<i64: 8, 2>}, {pipeline_mode = #tpu.pipeline_mode<synchronous>, transform_indices = @transform_1, window_bounds = array<i64: 1, 256>}, {pipeline_mode = #tpu.pipeline_mode<synchronous>, transform_indices = @transform_2, window_bounds = array<i64: 1, 256>}, {transform_indices = @transform_3, window_bounds = array<i64: 8, 512>}, {transform_indices = @transform_4, window_bounds = array<i64: 8, 512>}, {transform_indices = @transform_5, window_bounds = array<i64: 8, 1>}]} {
    %c0 = arith.constant 0 : index
    %c0_0 = arith.constant 0 : index
    %0 = vector.load %arg4[%c0, %c0_0] : memref<8x512xf32, #tpu.memory_space<vmem>>, vector<8x512xf32>
    %1 = vector.extract_strided_slice %0 {offsets = [0, 0], sizes = [8, 256], strides = [1, 1]} : vector<8x512xf32> to vector<8x256xf32>
    %2 = vector.extract_strided_slice %0 {offsets = [0, 256], sizes = [8, 256], strides = [1, 1]} : vector<8x512xf32> to vector<8x256xf32>
    %3 = arith.mulf %1, %1 : vector<8x256xf32>
    %4 = arith.mulf %2, %2 : vector<8x256xf32>
    %5 = arith.addf %3, %4 : vector<8x256xf32>
    %6 = math.sqrt %5 : vector<8x256xf32>
    %cst = arith.constant 5.000000e+00 : f32
    %7 = vector.broadcast %cst : f32 to vector<8x256xf32>
    %8 = arith.cmpf ogt, %6, %7 : vector<8x256xf32>
    %9 = arith.extui %8 : vector<8x256xi1> to vector<8x256xi32>
    %10 = arith.sitofp %9 : vector<8x256xi32> to vector<8x256xf32>
    %cst_1 = arith.constant dense<0.000000e+00> : vector<8xf32>
    %11 = vector.multi_reduction <add>, %10, %cst_1 [1] : vector<8x256xf32> to vector<8xf32>
    %12 = vector.shape_cast %11 : vector<8xf32> to vector<8x1xf32>
    %cst_2 = arith.constant 1.920000e+02 : f32
    %13 = vector.broadcast %cst_2 : f32 to vector<8x1xf32>
    %14 = arith.cmpf ogt, %12, %13 : vector<8x1xf32>
    %15 = vector.extract_strided_slice %10 {offsets = [0, 0], sizes = [8, 1], strides = [1, 1]} : vector<8x256xf32> to vector<8x1xf32>
    %16 = vector.extract_strided_slice %10 {offsets = [0, 15], sizes = [8, 1], strides = [1, 1]} : vector<8x256xf32> to vector<8x1xf32>
    %17 = vector.extract_strided_slice %10 {offsets = [0, 240], sizes = [8, 1], strides = [1, 1]} : vector<8x256xf32> to vector<8x1xf32>
    %18 = vector.extract_strided_slice %10 {offsets = [0, 255], sizes = [8, 1], strides = [1, 1]} : vector<8x256xf32> to vector<8x1xf32>
    %19 = arith.addf %15, %16 : vector<8x1xf32>
    %20 = arith.addf %19, %17 : vector<8x1xf32>
    %21 = arith.addf %20, %18 : vector<8x1xf32>
    %cst_3 = arith.constant 2.000000e+00 : f32
    %22 = vector.broadcast %cst_3 : f32 to vector<8x1xf32>
    %23 = arith.cmpf oge, %21, %22 : vector<8x1xf32>
    %c0_4 = arith.constant 0 : index
    %c0_5 = arith.constant 0 : index
    %24 = vector.load %arg1[%c0_4, %c0_5] : memref<8x2xf32, #tpu.memory_space<vmem>>, vector<8x2xf32>
    %25 = vector.extract_strided_slice %24 {offsets = [0, 0], sizes = [8, 1], strides = [1, 1]} : vector<8x2xf32> to vector<8x1xf32>
    %cst_6 = arith.constant 1.000000e+00 : f32
    %26 = vector.broadcast %cst_6 : f32 to vector<8x1xf32>
    %27 = arith.addf %25, %26 : vector<8x1xf32>
    %cst_7 = arith.constant 7.500000e+00 : f32
    %28 = vector.broadcast %cst_7 : f32 to vector<8x1xf32>
    %29 = arith.mulf %27, %28 : vector<8x1xf32>
    %30 = vector.extract_strided_slice %24 {offsets = [0, 1], sizes = [8, 1], strides = [1, 1]} : vector<8x2xf32> to vector<8x1xf32>
    %cst_8 = arith.constant 1.000000e+00 : f32
    %31 = vector.broadcast %cst_8 : f32 to vector<8x1xf32>
    %32 = arith.addf %30, %31 : vector<8x1xf32>
    %cst_9 = arith.constant 7.500000e+00 : f32
    %33 = vector.broadcast %cst_9 : f32 to vector<8x1xf32>
    %34 = arith.mulf %32, %33 : vector<8x1xf32>
    %c0_10 = arith.constant 0 : index
    %c0_11 = arith.constant 0 : index
    %35 = vector.load %arg2[%c0_10, %c0_11] : memref<1x256xf32, #tpu.memory_space<vmem>>, vector<1x256xf32>
    %36 = vector.broadcast %35 : vector<1x256xf32> to vector<8x256xf32>
    %37 = vector.broadcast %29 : vector<8x1xf32> to vector<8x256xf32>
    %38 = arith.subf %36, %37 : vector<8x256xf32>
    %39 = math.absf %38 : vector<8x256xf32>
    %cst_12 = arith.constant 1.000000e+00 : f32
    %40 = vector.broadcast %cst_12 : f32 to vector<8x256xf32>
    %41 = arith.subf %40, %39 : vector<8x256xf32>
    %cst_13 = arith.constant 0.000000e+00 : f32
    %42 = vector.broadcast %cst_13 : f32 to vector<8x256xf32>
    %43 = arith.maximumf %41, %42 : vector<8x256xf32>
    %c0_14 = arith.constant 0 : index
    %c0_15 = arith.constant 0 : index
    %44 = vector.load %arg3[%c0_14, %c0_15] : memref<1x256xf32, #tpu.memory_space<vmem>>, vector<1x256xf32>
    %45 = vector.broadcast %44 : vector<1x256xf32> to vector<8x256xf32>
    %46 = vector.broadcast %34 : vector<8x1xf32> to vector<8x256xf32>
    %47 = arith.subf %45, %46 : vector<8x256xf32>
    %48 = math.absf %47 : vector<8x256xf32>
    %cst_16 = arith.constant 1.000000e+00 : f32
    %49 = vector.broadcast %cst_16 : f32 to vector<8x256xf32>
    %50 = arith.subf %49, %48 : vector<8x256xf32>
    %cst_17 = arith.constant 0.000000e+00 : f32
    %51 = vector.broadcast %cst_17 : f32 to vector<8x256xf32>
    %52 = arith.maximumf %50, %51 : vector<8x256xf32>
    %53 = arith.mulf %43, %52 : vector<8x256xf32>
    %54 = arith.mulf %6, %53 : vector<8x256xf32>
    %cst_18 = arith.constant dense<0.000000e+00> : vector<8xf32>
    %55 = vector.multi_reduction <add>, %54, %cst_18 [1] : vector<8x256xf32> to vector<8xf32>
    %56 = vector.shape_cast %55 : vector<8xf32> to vector<8x1xf32>
    %cst_19 = arith.constant 5.000000e+00 : f32
    %57 = vector.broadcast %cst_19 : f32 to vector<8x1xf32>
    %58 = arith.cmpf olt, %56, %57 : vector<8x1xf32>
    %59 = arith.ori %58, %14 : vector<8x1xi1>
    %60 = arith.ori %59, %23 : vector<8x1xi1>
    %cst_20 = arith.constant 0.000000e+00 : f32
    %61 = vector.shape_cast %60 : vector<8x1xi1> to vector<8x1xi1>
    %62 = vector.broadcast %61 : vector<8x1xi1> to vector<8x512xi1>
    %63 = vector.broadcast %cst_20 : f32 to vector<8x512xf32>
    %64 = arith.select %62, %63, %0 : vector<8x512xi1>, vector<8x512xf32>
    %c0_21 = arith.constant 0 : index
    %c0_22 = arith.constant 0 : index
    %65 = vector.load %arg5[%c0_21, %c0_22] : memref<8x512xf32, #tpu.memory_space<vmem>>, vector<8x512xf32>
    tpu.vector_store %arg5[%c0_21, %c0_22], %64 {strides = array<i32>} : memref<8x512xf32, #tpu.memory_space<vmem>>, vector<8x512xf32>,
    %66 = arith.extui %60 : vector<8x1xi1> to vector<8x1xi32>
    %c0_23 = arith.constant 0 : index
    %c0_24 = arith.constant 0 : index
    %67 = vector.load %arg6[%c0_23, %c0_24] : memref<8x1xi32, #tpu.memory_space<vmem>>, vector<8x1xi32>
    tpu.vector_store %arg6[%c0_23, %c0_24], %66 {strides = array<i32>} : memref<8x1xi32, #tpu.memory_space<vmem>>, vector<8x1xi32>,
    return
  }
  func.func @transform_0(%arg0: i32) -> (i32, i32) {
    %c0_i32 = arith.constant 0 : i32
    %c0_i32_0 = arith.constant 0 : i32
    return %arg0, %c0_i32 : i32, i32
  }
  func.func @transform_1(%arg0: i32) -> (i32, i32) {
    %c0_i32 = arith.constant 0 : i32
    %c0_i32_0 = arith.constant 0 : i32
    %c0_i32_1 = arith.constant 0 : i32
    return %c0_i32, %c0_i32_0 : i32, i32
  }
  func.func @transform_2(%arg0: i32) -> (i32, i32) {
    %c0_i32 = arith.constant 0 : i32
    %c0_i32_0 = arith.constant 0 : i32
    %c0_i32_1 = arith.constant 0 : i32
    return %c0_i32, %c0_i32_0 : i32, i32
  }
  func.func @transform_3(%arg0: i32) -> (i32, i32) {
    %c0_i32 = arith.constant 0 : i32
    %c0_i32_0 = arith.constant 0 : i32
    return %arg0, %c0_i32 : i32, i32
  }
  func.func @transform_4(%arg0: i32) -> (i32, i32) {
    %c0_i32 = arith.constant 0 : i32
    %c0_i32_0 = arith.constant 0 : i32
    return %arg0, %c0_i32 : i32, i32
  }
  func.func @transform_5(%arg0: i32) -> (i32, i32) {
    %c0_i32 = arith.constant 0 : i32
    %c0_i32_0 = arith.constant 0 : i32
    return %arg0, %c0_i32 : i32, i32
  }
}

</mosaic_0001>

<bundles_post_ra>
// kernel: tpu_custom_call.1
= control target key start
LH: loop header
LB: loop body
LE: loop exit
PB: predicated region body
PF: predicated region fallthrough
CT: control target
= control target key end

     0   :  { %s557_s18 = smov 0   ;;  %s621_s0 = inlined_call_operand.vmem [shape: f32[16,2], index: 0, kind: input, shape index: {}]   ;;  %s622_s1 = inlined_call_operand.vmem [shape: f32[1,256], index: 1, kind: input, shape index: {}]   ;;  %s623_s2 = inlined_call_operand.vmem [shape: f32[1,256], index: 2, kind: input, shape index: {}]   ;;  %s624_s3 = inlined_call_operand.vmem [shape: f32[16,512], index: 3, kind: input, shape index: {}, may-alias: {3,4}]   ;;  %s625_s4 = inlined_call_operand.vmem [shape: f32[16,512], index: 4, kind: output, shape index: {0}, may-alias: {3,4}]   ;;  %s626_s5 = inlined_call_operand.vmem [shape: s32[16,1], index: 5, kind: output, shape index: {1}]  }
   0x1 LB: > { %s475_s19 = sadd.s32 4294967295, %s519_s18   ;;  %p479_p0 = scmp.ge.s32.totalorder %s519_s18, 1  ;;  %s519_s18 = sphi %s557_s18, %s16_s18  }
   0x2   : > { %p199_p1 = scmp.lt.s32.totalorder %s519_s18, 3 }
   0x4   : > { %p200_p2 = pnand %p479_p0, %p199_p1 }
   0x5   : > { %p235_p3 = scmp.lt.s32.totalorder (!%p200_p2), %s475_s19, 1  ;;  %s524_s28 = smov (!%p200_p2), 113  }
   0x6   : > { %203 = sbr.rel (%p200_p2) target bundleno = 399 (0x18f), region = 36  ;;  %s525_s29 = smov (!%p200_p2), 16  }
   0x7   : > { %s526_s30 = smov (!%p200_p2), 1  }
   0xb   : > { %v521_v0 = vmov 0   ;;  %s628_s19 = smov (!%p235_p3, %s475_s19), 1  ;;  %v522_v18 = vmov 1   ;;  %v523_v35 = vmov 0.0   ;;  %v315_v39 = vld [vmem:[%s622_s1] sm:$0x3] }
   0xc   : > { %506 = vset.pattern.permute.xlu0 %v521_v0  ;;  %s480_s20 = sshll.u32 %s628_s19, 3  ;;  %s490_s21 = sshll.u32 %s628_s19, 5  ;;  %v317_v40 = vperm.slane %v315_v39, 0  ;;  %v318_v41 = vperm.slane %v315_v39, 1  ;;  %v334_v43 = vld [vmem:[%s623_s2] sm:$0x3] }
   0xd   : > { %s238_s24 = scalar_lea.vmem %s621_s0, %s480_s20  ;;  %s243_s27 = scalar_lea.vmem %s624_s3, %s490_s21  ;;  %v336_v46 = vperm.slane %v334_v43, 0  ;;  %v337_v47 = vperm.slane %v334_v43, 1  ;;  %vm375_vm10 = vcmask 7168  }
   0xe   : > { %v580_v1 = vld [vmem:[%s243_s27] sm:$0xff]  ;;  %v582_v2 = vld [vmem:[%s243_s27 + $0x8] sm:$0xff]  ;;  %v584_v3 = vld [vmem:[%s243_s27 + $0x10] sm:$0xff]  ;;  %s252_s12 = scalar_lea.vmem %s626_s5, %s480_s20  ;;  %s248_s15 = scalar_lea.vmem %s625_s4, %s490_s21 }
   0xf   : > { %v586_v4 = vld [vmem:[%s243_s27 + $0x18] sm:$0xff]  ;;  %v257_v5 = vmul.f32 %v580_v1, %v580_v1  ;;  %v258_v6 = vmul.f32 %v582_v2, %v582_v2  ;;  %v259_v7 = vmul.f32 %v584_v3, %v584_v3  ;;  %v312_v8 = vld [vmem:[%s238_s24] sm:$0xff] }
  0x10   : > { %v260_v9 = vmul.f32 %v586_v4, %v586_v4  ;;  %v313_v10 = vadd.f32 1.0, %v312_v8 }
  0x11   : > { %v261_v11 = vadd.f32 %v259_v7, %v257_v5 }
  0x12   : > { %v262_v12 = vadd.f32 %v260_v9, %v258_v6  ;;  %v314_v13 = vmul.f32 7.5, %v313_v10 }
  0x13   : > { %509 = vrsqrt.f32 %v261_v11  ;;  %vm270_vm0 = vcmp.eq.f32.partialorder %v261_v11, inf  ;;  %v273_v26 = vand.u32 2147483648, %v261_v11  ;;  %vm272_vm1 = vcmp.eq.f32.partialorder %v261_v11, 0.0 }
  0x14   : > { %323 = vperm.xlu0 %506, %v314_v13   ;;  %511 = vrsqrt.f32 %v262_v12  ;;  %vm282_vm2 = vcmp.eq.f32.partialorder %v262_v12, inf  ;;  %v285_v29 = vand.u32 2147483648, %v262_v12  ;;  %vm284_vm3 = vcmp.eq.f32.partialorder %v262_v12, 0.0 }
  0x19   : > { %v510_v14 = vpop.eup %509 }
  0x1a   : > { %v512_v15 = vpop.eup %511  ;;  %v264_v16 = vmul.f32 %v510_v14, %v261_v11 }
  0x1b   : > { %v276_v17 = vmul.f32 %v512_v15, %v262_v12 }
  0x1c   : > { %507 = vset.pattern.permute.xlu0 %v522_v18  ;;  %v265_v19 = vmul.f32 %v510_v14, %v264_v16 }
  0x1d   : > { %341 = vperm.xlu0 %507, %v314_v13   ;;  %v277_v20 = vmul.f32 %v512_v15, %v276_v17 }
  0x1e   : > { %v266_v21 = vmul.f32 0.5, %v265_v19 }
  0x1f   : > { %v278_v22 = vmul.f32 0.5, %v277_v20 }
  0x20   : > { %v267_v23 = vsub.f32 1.5, %v266_v21 }
  0x21   : > { %v279_v24 = vsub.f32 1.5, %v278_v22 }
  0x22   : > { %v268_v25 = vmul.f32 %v510_v14, %v267_v23 }
  0x23   : > { %v280_v27 = vmul.f32 %v512_v15, %v279_v24 }
  0x24   : > { %v269_v28 = vmul.f32 %v268_v25, %v261_v11 }
  0x25   : > { %v281_v30 = vmul.f32 %v280_v27, %v262_v12  ;;  %508 = vset.pattern.permute.xlu0 %v521_v0 }
  0x26   : > { %v271_v31 = vsel %vm270_vm0, %v261_v11, %v269_v28 }
  0x27   : > { %v274_v32 = vsel %vm272_vm1, %v273_v26, %v271_v31  ;;  %v283_v33 = vsel %vm282_vm2, %v262_v12, %v281_v30 }
  0x28   : > { %vm287_vm4 = vcmp.gt.f32.partialorder %v274_v32, 5.0  ;;  %v286_v34 = vsel %vm284_vm3, %v285_v29, %v283_v33 }
  0x29   : > { %v486_v36 = vsel %vm287_vm4, 1.0, %v523_v35  ;;  %vm288_vm5 = vcmp.gt.f32.partialorder %v286_v34, 5.0 }
  0x2a   : > { %298 = vrot.lane.b32.xlu1 %v486_v36, %s524_s28  ;;  %v487_v37 = vsel %vm288_vm5, 1.0, %v523_v35 }
  0x2b   : > { %v293_v38 = vadd.f32 %v487_v37, %v486_v36 }
  0x2d   : > { %294 = vadd.xlane.f32.xlu2 %v293_v38 }
  0x32   : > { %303 = vrot.lane.b32.xlu1 %v487_v37, %s525_s29 }
  0x45   : > { %307 = vrot.lane.b32.xlu2 %v487_v37, %s526_s30 }
  0x86   : > { %v324_v42 = vpop.permute.xlu0 %323 }
  0x87   : > { %v326_v44 = vsub.f32 %v317_v40, %v324_v42  ;;  %v327_v45 = vsub.f32 %v318_v41, %v324_v42 }
  0x89   : > { %v328_v48 = vand.u32 2147483647, %v326_v44  ;;  %v329_v49 = vand.u32 2147483647, %v327_v45 }
  0x8b   : > { %v330_v53 = vsub.f32 1.0, %v328_v48  ;;  %v331_v54 = vsub.f32 1.0, %v329_v49 }
  0x8d   : > { %v332_v59 = vmax.f32 %v330_v53, 0.0  ;;  %v333_v60 = vmax.f32 %v331_v54, 0.0 }
  0x8f   : > { %v342_v50 = vpop.permute.xlu0 %341 }
  0x90   : > { %v344_v51 = vsub.f32 %v336_v46, %v342_v50  ;;  %v345_v52 = vsub.f32 %v337_v47, %v342_v50 }
  0x92   : > { %v346_v55 = vand.u32 2147483647, %v344_v51  ;;  %v347_v56 = vand.u32 2147483647, %v345_v52 }
  0x94   : > { %v348_v57 = vsub.f32 1.0, %v346_v55  ;;  %v349_v58 = vsub.f32 1.0, %v347_v56 }
  0x96   : > { %v350_v61 = vmax.f32 %v348_v57, 0.0  ;;  %v351_v62 = vmax.f32 %v349_v58, 0.0 }
  0x98   : > { %v352_v63 = vmul.f32 %v350_v61, %v332_v59  ;;  %v353_v5 = vmul.f32 %v351_v62, %v333_v60 }
  0x9a   : > { %v354_v6 = vmul.f32 %v352_v63, %v274_v32  ;;  %v355_v7 = vmul.f32 %v353_v5, %v286_v34 }
  0x9c   : > { %v356_v8 = vadd.f32 %v355_v7, %v354_v6  ;;  %v299_v9 = vpop.permute.xlu1 %298 }
  0x9d   : > { %v301_v11 = vadd.f32 %v486_v36, %v299_v9 }
  0x9e   : > { %357 = vadd.xlane.f32.xlu1 %v356_v8 }
  0xa0   : > { %v295_v10 = vpop.xlane.xlu2 %294 }
  0xa1   : > { %vm296_vm6 = vcmp.gt.f32.partialorder %v295_v10, 192.0 }
  0xa4   : > { %v304_v12 = vpop.permute.xlu1 %303 }
  0xa5   : > { %v306_v13 = vadd.f32 %v304_v12, %v301_v11 }
  0xa8   : > { %v308_v14 = vpop.permute.xlu2 %307 }
  0xa9   : > { %v310_v15 = vadd.f32 %v308_v14, %v306_v13 }
  0xab   : > { %vm311_vm8 = vcmp.ge.f32.partialorder %v310_v15, 2.0 }
 0x111   : > { %v358_v16 = vpop.xlane.xlu1 %357 }
 0x112   : > { %vm359_vm7 = vcmp.lt.f32.partialorder %v358_v16, 5.0 }
 0x113   : > { %vm360_vm9 = vmor %vm359_vm7, %vm296_vm6 }
 0x114   : > { %vm361_vm11 = vmor %vm360_vm9, %vm311_vm8 }
 0x115   : > { %v362_v17 = vsel %vm361_vm11, 1, %v521_v0 }
 0x116   : > { %364 = vperm.xlu0 %508, %v362_v17   ;;  %376 = vst.msk [vmem:[%s252_s12] sm:$0xff] %vm375_vm10, %v362_v17 }
 0x188   : > { %v365_v18 = vpop.permute.xlu0 %364 }
 0x189   : > { %vm366_vm12 = vcmp.eq.s32.totalorder %v365_v18, 1 }
 0x18a   : > { %v367_v19 = vsel %vm366_vm12, 0.0, %v580_v1  ;;  %v368_v20 = vsel %vm366_vm12, 0.0, %v582_v2  ;;  %v369_v21 = vsel %vm366_vm12, 0.0, %v584_v3  ;;  %v370_v22 = vsel %vm366_vm12, 0.0, %v586_v4 }
 0x18b   : > { %371 = vst [vmem:[%s248_s15] sm:$0xff] %v367_v19 }
 0x18c   : > { %372 = vst [vmem:[%s248_s15 + $0x8] sm:$0xff] %v368_v20 }
 0x18d   : > { %373 = vst [vmem:[%s248_s15 + $0x10] sm:$0xff] %v369_v21 }
 0x18e   : > { %374 = vst [vmem:[%s248_s15 + $0x18] sm:$0xff] %v370_v22 }
 0x18f PF: > { %s16_s18 = sadd.s32 1, %s519_s18  }
 0x190   : > { %p13_p4 = scmp.ge.s32.totalorder %s16_s18, 4  }
 0x192   :  { %15 = sbr.rel (!%p13_p4) target bundleno = 1 (0x1), region = 81 }

</bundles_post_ra>
